<compile_context>
chip_gen: v7x
topology: tpu7x:2x2x1
jax: 0.10.0
libtpu: 0.0.40
codegen_flags: <defaults>
</compile_context>

<pallas_src>
import functools

import jax
import jax.numpy as jnp
from jax.experimental import pallas as pl
from jax.experimental.pallas import tpu as pltpu


# ---------------------------------------------------------------------------
# Kernels
# ---------------------------------------------------------------------------
def _fused_kernel(g_ref, a_ref, pe_ref, ke_ref, o_ref, accg_ref, acce_ref, *,
                  graph_scale, effect_scale):
    """lambda*MSE(graph, adjacency) + MSE(effects, pathway_effects), fused."""
    c = pl.program_id(0)                  # core-split axis ("parallel")
    i = pl.program_id(1)                  # graph row-tile axis ("arbitrary")

    @pl.when(i == 0)
    def _init():
        accg_ref[...] = jnp.zeros_like(accg_ref)
        acce_ref[...] = jnp.zeros_like(acce_ref)

    # Per-lane partial sums; the cross-lane reduce is deferred to finalize.
    gd = g_ref[...].astype(jnp.float32) - a_ref[...].astype(jnp.float32)
    accg_ref[...] += jnp.sum(gd * gd, axis=0, keepdims=True)

    # Effects blocks have a constant index_map (DMA'd once, stay resident);
    # the guard makes sure they are accumulated exactly once overall.
    @pl.when(jnp.logical_and(c == 0, i == 0))
    def _effects():
        ed = pe_ref[...].astype(jnp.float32) - ke_ref[...].astype(jnp.float32)
        acce_ref[...] += jnp.sum(ed * ed, axis=0, keepdims=True)

    @pl.when(i == pl.num_programs(1) - 1)
    def _finalize():
        part = (jnp.float32(graph_scale) * jnp.sum(accg_ref[...]) +
                jnp.float32(effect_scale) * jnp.sum(acce_ref[...]))
        o_ref[...] = jnp.broadcast_to(part, o_ref.shape)


def _pair_kernel(x_ref, y_ref, o_ref, acc_ref, *, scale):
    """scale * sum((x - y)^2), row-tiled; used when only one loss term exists."""
    i = pl.program_id(1)

    @pl.when(i == 0)
    def _init():
        acc_ref[...] = jnp.zeros_like(acc_ref)

    d = x_ref[...].astype(jnp.float32) - y_ref[...].astype(jnp.float32)
    acc_ref[...] += jnp.sum(d * d, axis=0, keepdims=True)

    @pl.when(i == pl.num_programs(1) - 1)
    def _finalize():
        part = jnp.float32(scale) * jnp.sum(acc_ref[...])
        o_ref[...] = jnp.broadcast_to(part, o_ref.shape)


# ---------------------------------------------------------------------------
# Tiling helpers
# ---------------------------------------------------------------------------
@functools.lru_cache(maxsize=1)
def _auto_block_bytes():
    """Per-input block byte budget, scaled to this generation's VMEM."""
    try:
        vmem = pltpu.get_tpu_info().vmem_capacity_bytes
    except Exception:  # interpret mode / query unavailable
        return 4 << 20
    # 2 streamed inputs x 2 pipeline buffers must stay well inside VMEM:
    # v7x (64 MiB)  -> 4 MiB blocks, v5e/v6e (128 MiB) -> 8 MiB blocks.
    return max(2 << 20, min(8 << 20, vmem // 16))


def _row_tiling(n_rows, n_cols, itemsize=4, target_block_bytes=None):
    """Contiguous row-block tiling: (padded_rows, tile_rows, n_cores, n_inner).

    Rows are zero-padded to a multiple of 16 so that every tile height is a
    multiple of 8 (sublane alignment) and the tile count can be even, allowing
    a leading size-2 "parallel" grid axis that v7x's two TensorCores can split
    (a harmless serial axis on v5e/v6e).
    """
    if target_block_bytes is None:
        target_block_bytes = _auto_block_bytes()
    padded = ((n_rows + 15) // 16) * 16
    max_tm = max(8, (target_block_bytes // max(1, n_cols * itemsize)) // 8 * 8)
    max_tm = min(max_tm, padded)

    best_even = None
    best_any = None
    tm = max_tm
    while tm >= 8:
        if padded % tm == 0:
            if best_any is None:
                best_any = tm
            if (padded // tm) % 2 == 0:
                best_even = tm
                break
        tm -= 8
    if best_even is not None:
        return padded, best_even, 2, (padded // best_even) // 2
    # padded % 16 == 0 means tm=8 always yields an even tile count, so this
    # fallback is effectively unreachable; kept for safety.
    tm = best_any if best_any is not None else padded
    return padded, tm, 1, padded // tm


def _pad_rows(x, padded_rows):
    pad = padded_rows - x.shape[0]
    if pad == 0:
        return x
    # Zero rows contribute exactly 0 to the squared-difference sum.
    return jnp.pad(x, ((0, pad), (0, 0)))


# ---------------------------------------------------------------------------
# pallas_call wrappers
# ---------------------------------------------------------------------------
def _scaled_sq_err_sum(x, y, scale, target_block_bytes=None):
    """scale * sum((x - y)^2) via a row-tiled Pallas reduction."""
    rows, cols = x.shape
    padded, tm, n_cores, n_inner = _row_tiling(rows, cols, 4, target_block_bytes)
    x = _pad_rows(x, padded)
    y = _pad_rows(y, padded)

    block_bytes = tm * cols * 4
    vmem_limit = max(int((2 * 2 * block_bytes + cols * 4) * 1.3) + (2 << 20),
                     8 << 20)
    cost = pl.CostEstimate(flops=3 * rows * cols, transcendentals=0,
                           bytes_accessed=2 * rows * cols * 4
                           + n_cores * 8 * 128 * 4)

    out = pl.pallas_call(
        functools.partial(_pair_kernel, scale=float(scale)),
        out_shape=jax.ShapeDtypeStruct((n_cores, 8, 128), jnp.float32),
        grid_spec=pltpu.PrefetchScalarGridSpec(
            num_scalar_prefetch=0,
            grid=(n_cores, n_inner),
            in_specs=[
                pl.BlockSpec((tm, cols), lambda c, i: (c * n_inner + i, 0)),
                pl.BlockSpec((tm, cols), lambda c, i: (c * n_inner + i, 0)),
            ],
            out_specs=pl.BlockSpec((1, 8, 128), lambda c, i: (c, 0, 0)),
            scratch_shapes=[pltpu.VMEM((1, cols), jnp.float32)],
        ),
        compiler_params=pltpu.CompilerParams(
            dimension_semantics=("parallel", "arbitrary"),
            vmem_limit_bytes=vmem_limit),
        cost_estimate=cost,
    )(x, y)
    return jnp.sum(out[:, 0, 0])


def _fused_loss(pred_graph, pathway_adj, pred_eff, pathway_eff, lambda_pathway,
                target_block_bytes=None):
    """Both terms present: one fused pallas_call (one launch, one HBM pass)."""
    dg_r, dg_c = pred_graph.shape
    b, de_c = pred_eff.shape
    graph_scale = float(lambda_pathway) / float(dg_r * dg_c)
    effect_scale = 1.0 / float(b * de_c)

    padded, tm, n_cores, n_inner = _row_tiling(dg_r, dg_c, 4, target_block_bytes)
    g = _pad_rows(pred_graph, padded)
    a = _pad_rows(pathway_adj, padded)

    block_bytes = tm * dg_c * 4
    eff_bytes = b * de_c * 4
    vmem_limit = max(int((2 * 2 * block_bytes + 2 * 2 * eff_bytes
                          + (dg_c + de_c) * 4) * 1.3) + (2 << 20), 8 << 20)
    cost = pl.CostEstimate(
        flops=3 * (dg_r * dg_c + b * de_c), transcendentals=0,
        bytes_accessed=(2 * dg_r * dg_c + 2 * b * de_c) * 4
        + n_cores * 8 * 128 * 4)

    kernel = functools.partial(_fused_kernel, graph_scale=graph_scale,
                               effect_scale=effect_scale)
    out = pl.pallas_call(
        kernel,
        out_shape=jax.ShapeDtypeStruct((n_cores, 8, 128), jnp.float32),
        grid_spec=pltpu.PrefetchScalarGridSpec(
            num_scalar_prefetch=0,
            grid=(n_cores, n_inner),
            in_specs=[
                pl.BlockSpec((tm, dg_c), lambda c, i: (c * n_inner + i, 0)),
                pl.BlockSpec((tm, dg_c), lambda c, i: (c * n_inner + i, 0)),
                pl.BlockSpec((b, de_c), lambda c, i: (0, 0)),   # resident
                pl.BlockSpec((b, de_c), lambda c, i: (0, 0)),   # resident
            ],
            out_specs=pl.BlockSpec((1, 8, 128), lambda c, i: (c, 0, 0)),
            scratch_shapes=[pltpu.VMEM((1, dg_c), jnp.float32),
                            pltpu.VMEM((1, de_c), jnp.float32)],
        ),
        compiler_params=pltpu.CompilerParams(
            dimension_semantics=("parallel", "arbitrary"),
            vmem_limit_bytes=vmem_limit),
        cost_estimate=cost,
    )(g, a, pred_eff, pathway_eff)
    return jnp.sum(out[:, 0, 0])


def biological_consistency_loss(predicted_graph, predicted_effects,
                                pathway_adjacency=None, pathway_effects=None,
                                lambda_pathway=0.5, target_block_bytes=None):
    """Pallas implementation of BiologicalConsistencyLoss.forward.

    Missing (None) terms are specialized away at trace time, so no HBM traffic
    is paid for operands whose contribution is zero.
    """
    has_graph = pathway_adjacency is not None
    has_effects = pathway_effects is not None
    if has_graph and has_effects:
        return _fused_loss(predicted_graph, pathway_adjacency,
                           predicted_effects, pathway_effects, lambda_pathway,
                           target_block_bytes)
    if has_graph:
        dg_r, dg_c = predicted_graph.shape
        return _scaled_sq_err_sum(predicted_graph, pathway_adjacency,
                                  float(lambda_pathway) / float(dg_r * dg_c),
                                  target_block_bytes)
    if has_effects:
        b, de_c = predicted_effects.shape
        return _scaled_sq_err_sum(predicted_effects, pathway_effects,
                                  1.0 / float(b * de_c), target_block_bytes)
    return jnp.float32(0.0)


# ---------------------------------------------------------------------------
# Pure-JAX reference mirroring the PyTorch forward
# ---------------------------------------------------------------------------
def _reference(predicted_graph, predicted_effects, pathway_adjacency=None,
               pathway_effects=None, lambda_pathway=0.5):
    total = jnp.float32(0.0)
    if pathway_adjacency is not None:
        total = total + lambda_pathway * jnp.mean(
            (predicted_graph - pathway_adjacency) ** 2)
    if pathway_effects is not None:
        total = total + jnp.mean((predicted_effects - pathway_effects) ** 2)
    return total


if __name__ == "__main__":
    key = jax.random.PRNGKey(0)
    k1, k2, k3, k4 = jax.random.split(key, 4)

    # Small shapes consistent with the module: D genes, B perturbations.
    D, B = 32, 8
    predicted_graph = jax.random.normal(k1, (D, D), jnp.float32)
    pathway_graph = (jax.random.uniform(k2, (D, D)) > 0.7).astype(jnp.float32)
    predicted_effects = jax.random.normal(k3, (B, D), jnp.float32)
    pathway_effects = jax.random.normal(k4, (B, D), jnp.float32)

    # Both terms present (fused kernel).
    loss = biological_consistency_loss(
        predicted_graph, predicted_effects,
        pathway_adjacency=pathway_graph,
        pathway_effects=pathway_effects,
        lambda_pathway=0.5)
    loss = jax.block_until_ready(loss)
    ref = _reference(predicted_graph, predicted_effects,
                     pathway_graph, pathway_effects, 0.5)
    assert jnp.allclose(loss, ref, rtol=1e-5, atol=1e-6), (loss, ref)

    # Graph-only branch (effects never streamed).
    loss_g = biological_consistency_loss(
        predicted_graph, predicted_effects, pathway_adjacency=pathway_graph)
    ref_g = _reference(predicted_graph, predicted_effects,
                       pathway_graph, None, 0.5)
    assert jnp.allclose(jax.block_until_ready(loss_g), ref_g,
                        rtol=1e-5, atol=1e-6), (loss_g, ref_g)

    # Effects-only branch (the D x D graph never touches HBM).
    loss_e = biological_consistency_loss(
        predicted_graph, predicted_effects, pathway_effects=pathway_effects)
    ref_e = _reference(predicted_graph, predicted_effects,
                       None, pathway_effects, 0.5)
    assert jnp.allclose(jax.block_until_ready(loss_e), ref_e,
                        rtol=1e-5, atol=1e-6), (loss_e, ref_e)

    # Neither term: exact 0, no kernel launched.
    loss_0 = biological_consistency_loss(predicted_graph, predicted_effects)
    assert float(jax.block_until_ready(loss_0)) == 0.0

    # Multi-row-tile accumulation + 2-way core split + row-padding path
    # (200 rows -> padded to 208; tiny block budget forces 13 inner steps).
    D2, B2 = 200, 3
    g2 = jax.random.normal(k1, (D2, D2), jnp.float32)
    a2 = (jax.random.uniform(k2, (D2, D2)) > 0.9).astype(jnp.float32)
    pe2 = jax.random.normal(k3, (B2, D2), jnp.float32)
    ke2 = jax.random.normal(k4, (B2, D2), jnp.float32)
    loss2 = biological_consistency_loss(g2, pe2, a2, ke2, 0.5,
                                        target_block_bytes=32 * 1024)
    ref2 = _reference(g2, pe2, a2, ke2, 0.5)
    assert jnp.allclose(jax.block_until_ready(loss2), ref2,
                        rtol=1e-4, atol=1e-5), (loss2, ref2)

    print("KERNEL_OK")
</pallas_src>

<mosaic_0001>
module attributes {stable_mosaic.version = 11 : i64} {
  func.func @_fused_kernel(%arg0: i32, %arg1: i32, %arg2: memref<16x32xf32, #tpu.memory_space<vmem>>, %arg3: memref<16x32xf32, #tpu.memory_space<vmem>>, %arg4: memref<8x32xf32, #tpu.memory_space<vmem>>, %arg5: memref<8x32xf32, #tpu.memory_space<vmem>>, %arg6: memref<1x8x128xf32, #tpu.memory_space<vmem>>, %arg7: memref<1x32xf32, #tpu.memory_space<vmem>>, %arg8: memref<1x32xf32, #tpu.memory_space<vmem>>) attributes {dimension_semantics = [#tpu.dimension_semantics<parallel>, #tpu.dimension_semantics<arbitrary>], iteration_bounds = array<i64: 2, 1>, scalar_prefetch = 0 : i64, scratch_operands = 2 : i64, tpu.core_type = #tpu.core_type<tc>, window_params = [{transform_indices = @transform_0, window_bounds = array<i64: 16, 32>}, {transform_indices = @transform_1, window_bounds = array<i64: 16, 32>}, {pipeline_mode = #tpu.pipeline_mode<synchronous>, transform_indices = @transform_2, window_bounds = array<i64: 8, 32>}, {pipeline_mode = #tpu.pipeline_mode<synchronous>, transform_indices = @transform_3, window_bounds = array<i64: 8, 32>}, {transform_indices = @transform_4, window_bounds = array<i64: 1, 8, 128>}]} {
    %c0_i32 = arith.constant 0 : i32
    %0 = arith.cmpi eq, %arg1, %c0_i32 : i32
    %1 = arith.extui %0 : i1 to i32
    %c0_i32_0 = arith.constant 0 : i32
    %2 = arith.cmpi ne, %1, %c0_i32_0 : i32
    scf.if %2 {
      %cst_13 = arith.constant 0.000000e+00 : f32
      %20 = vector.broadcast %cst_13 : f32 to vector<1x32xf32>
      %c0_14 = arith.constant 0 : index
      %c0_15 = arith.constant 0 : index
      %21 = vector.load %arg7[%c0_14, %c0_15] : memref<1x32xf32, #tpu.memory_space<vmem>>, vector<1x32xf32>
      tpu.vector_store %arg7[%c0_14, %c0_15], %20 {strides = array<i32>} : memref<1x32xf32, #tpu.memory_space<vmem>>, vector<1x32xf32>,
      %cst_16 = arith.constant 0.000000e+00 : f32
      %22 = vector.broadcast %cst_16 : f32 to vector<1x32xf32>
      %c0_17 = arith.constant 0 : index
      %c0_18 = arith.constant 0 : index
      %23 = vector.load %arg8[%c0_17, %c0_18] : memref<1x32xf32, #tpu.memory_space<vmem>>, vector<1x32xf32>
      tpu.vector_store %arg8[%c0_17, %c0_18], %22 {strides = array<i32>} : memref<1x32xf32, #tpu.memory_space<vmem>>, vector<1x32xf32>,
    } else {
    }
    %c0 = arith.constant 0 : index
    %c0_1 = arith.constant 0 : index
    %3 = vector.load %arg2[%c0, %c0_1] : memref<16x32xf32, #tpu.memory_space<vmem>>, vector<16x32xf32>
    %c0_2 = arith.constant 0 : index
    %c0_3 = arith.constant 0 : index
    %4 = vector.load %arg3[%c0_2, %c0_3] : memref<16x32xf32, #tpu.memory_space<vmem>>, vector<16x32xf32>
    %5 = arith.subf %3, %4 : vector<16x32xf32>
    %c0_4 = arith.constant 0 : index
    %c0_5 = arith.constant 0 : index
    %6 = vector.load %arg7[%c0_4, %c0_5] : memref<1x32xf32, #tpu.memory_space<vmem>>, vector<1x32xf32>
    %7 = arith.mulf %5, %5 : vector<16x32xf32>
    %cst = arith.constant dense<0.000000e+00> : vector<32xf32>
    %8 = vector.multi_reduction <add>, %7, %cst [0] : vector<16x32xf32> to vector<32xf32>
    %9 = vector.shape_cast %8 : vector<32xf32> to vector<1x32xf32>
    %10 = arith.addf %6, %9 : vector<1x32xf32>
    %c0_6 = arith.constant 0 : index
    %c0_7 = arith.constant 0 : index
    %11 = vector.load %arg7[%c0_6, %c0_7] : memref<1x32xf32, #tpu.memory_space<vmem>>, vector<1x32xf32>
    tpu.vector_store %arg7[%c0_6, %c0_7], %10 {strides = array<i32>} : memref<1x32xf32, #tpu.memory_space<vmem>>, vector<1x32xf32>,
    %c0_i32_8 = arith.constant 0 : i32
    %12 = arith.cmpi eq, %arg0, %c0_i32_8 : i32
    %c0_i32_9 = arith.constant 0 : i32
    %13 = arith.cmpi eq, %arg1, %c0_i32_9 : i32
    %14 = arith.andi %12, %13 : i1
    %15 = arith.extui %14 : i1 to i32
    %c0_i32_10 = arith.constant 0 : i32
    %16 = arith.cmpi ne, %15, %c0_i32_10 : i32
    scf.if %16 {
      %c0_13 = arith.constant 0 : index
      %c0_14 = arith.constant 0 : index
      %20 = vector.load %arg4[%c0_13, %c0_14] : memref<8x32xf32, #tpu.memory_space<vmem>>, vector<8x32xf32>
      %c0_15 = arith.constant 0 : index
      %c0_16 = arith.constant 0 : index
      %21 = vector.load %arg5[%c0_15, %c0_16] : memref<8x32xf32, #tpu.memory_space<vmem>>, vector<8x32xf32>
      %22 = arith.subf %20, %21 : vector<8x32xf32>
      %c0_17 = arith.constant 0 : index
      %c0_18 = arith.constant 0 : index
      %23 = vector.load %arg8[%c0_17, %c0_18] : memref<1x32xf32, #tpu.memory_space<vmem>>, vector<1x32xf32>
      %24 = arith.mulf %22, %22 : vector<8x32xf32>
      %cst_19 = arith.constant dense<0.000000e+00> : vector<32xf32>
      %25 = vector.multi_reduction <add>, %24, %cst_19 [0] : vector<8x32xf32> to vector<32xf32>
      %26 = vector.shape_cast %25 : vector<32xf32> to vector<1x32xf32>
      %27 = arith.addf %23, %26 : vector<1x32xf32>
      %c0_20 = arith.constant 0 : index
      %c0_21 = arith.constant 0 : index
      %28 = vector.load %arg8[%c0_20, %c0_21] : memref<1x32xf32, #tpu.memory_space<vmem>>, vector<1x32xf32>
      tpu.vector_store %arg8[%c0_20, %c0_21], %27 {strides = array<i32>} : memref<1x32xf32, #tpu.memory_space<vmem>>, vector<1x32xf32>,
    } else {
    }
    %c0_i32_11 = arith.constant 0 : i32
    %17 = arith.cmpi eq, %arg1, %c0_i32_11 : i32
    %18 = arith.extui %17 : i1 to i32
    %c0_i32_12 = arith.constant 0 : i32
    %19 = arith.cmpi ne, %18, %c0_i32_12 : i32
    scf.if %19 {
      %c0_13 = arith.constant 0 : index
      %c0_14 = arith.constant 0 : index
      %20 = vector.load %arg7[%c0_13, %c0_14] : memref<1x32xf32, #tpu.memory_space<vmem>>, vector<1x32xf32>
      %21 = vector.shape_cast %20 : vector<1x32xf32> to vector<1x1x32xf32>
      %cst_15 = arith.constant dense<0.000000e+00> : vector<1xf32>
      %22 = vector.multi_reduction <add>, %21, %cst_15 [1, 2] : vector<1x1x32xf32> to vector<1xf32>
      %23 = vector.shape_cast %22 : vector<1xf32> to vector<1x1x1xf32>
      %24 = vector.extract %23[0, 0, 0] : f32 from vector<1x1x1xf32>
      %cst_16 = arith.constant 4.8828125E-4 : f32
      %25 = arith.mulf %cst_16, %24 : f32
      %c0_17 = arith.constant 0 : index
      %c0_18 = arith.constant 0 : index
      %26 = vector.load %arg8[%c0_17, %c0_18] : memref<1x32xf32, #tpu.memory_space<vmem>>, vector<1x32xf32>
      %27 = vector.shape_cast %26 : vector<1x32xf32> to vector<1x1x32xf32>
      %cst_19 = arith.constant dense<0.000000e+00> : vector<1xf32>
      %28 = vector.multi_reduction <add>, %27, %cst_19 [1, 2] : vector<1x1x32xf32> to vector<1xf32>
      %29 = vector.shape_cast %28 : vector<1xf32> to vector<1x1x1xf32>
      %30 = vector.extract %29[0, 0, 0] : f32 from vector<1x1x1xf32>
      %cst_20 = arith.constant 3.906250e-03 : f32
      %31 = arith.mulf %cst_20, %30 : f32
      %32 = arith.addf %25, %31 : f32
      %33 = vector.broadcast %32 : f32 to vector<1x8x128xf32>
      %c0_21 = arith.constant 0 : index
      %c0_22 = arith.constant 0 : index
      %c0_23 = arith.constant 0 : index
      %34 = vector.load %arg6[%c0_21, %c0_22, %c0_23] : memref<1x8x128xf32, #tpu.memory_space<vmem>>, vector<1x8x128xf32>
      tpu.vector_store %arg6[%c0_21, %c0_22, %c0_23], %33 {strides = array<i32>} : memref<1x8x128xf32, #tpu.memory_space<vmem>>, vector<1x8x128xf32>,
    } else {
    }
    return
  }
  func.func @transform_0(%arg0: i32, %arg1: i32) -> (i32, i32) {
    %c1_i32 = arith.constant 1 : i32
    %0 = arith.muli %arg0, %c1_i32 : i32
    %1 = arith.addi %0, %arg1 : i32
    %c0_i32 = arith.constant 0 : i32
    %c0_i32_0 = arith.constant 0 : i32
    return %1, %c0_i32 : i32, i32
  }
  func.func @transform_1(%arg0: i32, %arg1: i32) -> (i32, i32) {
    %c1_i32 = arith.constant 1 : i32
    %0 = arith.muli %arg0, %c1_i32 : i32
    %1 = arith.addi %0, %arg1 : i32
    %c0_i32 = arith.constant 0 : i32
    %c0_i32_0 = arith.constant 0 : i32
    return %1, %c0_i32 : i32, i32
  }
  func.func @transform_2(%arg0: i32, %arg1: i32) -> (i32, i32) {
    %c0_i32 = arith.constant 0 : i32
    %c0_i32_0 = arith.constant 0 : i32
    %c0_i32_1 = arith.constant 0 : i32
    return %c0_i32, %c0_i32_0 : i32, i32
  }
  func.func @transform_3(%arg0: i32, %arg1: i32) -> (i32, i32) {
    %c0_i32 = arith.constant 0 : i32
    %c0_i32_0 = arith.constant 0 : i32
    %c0_i32_1 = arith.constant 0 : i32
    return %c0_i32, %c0_i32_0 : i32, i32
  }
  func.func @transform_4(%arg0: i32, %arg1: i32) -> (i32, i32, i32) {
    %c0_i32 = arith.constant 0 : i32
    %c0_i32_0 = arith.constant 0 : i32
    %c0_i32_1 = arith.constant 0 : i32
    return %arg0, %c0_i32, %c0_i32_0 : i32, i32, i32
  }
}

</mosaic_0001>

<bundles_post_ra>
// kernel: tpu_custom_call.1
= control target key start
LH: loop header
LB: loop body
LE: loop exit
PB: predicated region body
PF: predicated region fallthrough
CT: control target
= control target key end

     0   :  { %s1107_s0 = inlined_call_operand.hbm [shape: f32[32,32], index: 0, kind: input, shape index: {}]   ;;  %s1108_s1 = inlined_call_operand.hbm [shape: f32[32,32], index: 1, kind: input, shape index: {}]   ;;  %s1109_s2 = inlined_call_operand.hbm [shape: f32[8,32], index: 2, kind: input, shape index: {}]   ;;  %s1110_s3 = inlined_call_operand.vmem [shape: f32[8,32], index: 3, kind: input, shape index: {}]   ;;  %s1111_s4 = inlined_call_operand.hbm [shape: f32[2,8,128], index: 4, kind: output, shape index: {}]  }
   0x1   :  { %1119 = sst [smem:[#allocation16_spill]] %s1107_s0 }
   0x2   :  { %1120 = sst [smem:[#allocation17_spill]] %s1109_s2 }
   0x3   :  { %9 = vsyncpa [#allocation5], 0 }
   0x4   :  { %11 = vsyncpa [#allocation5 + $0x1], 0 }
   0x5   :  { %12 = vsyncpa [#allocation8], 0 }
   0x6   :  { %14 = vsyncpa [#allocation8 + $0x1], 0 }
   0x7   :  { %15 = vsyncpa [#allocation6], 0 }
   0x8   :  { %17 = vsyncpa [#allocation6 + $0x1], 0  ;;  %s815_s15 = smov 0   ;;  %s817_s16 = smov 0  }
   0x9   :  { %s819_s17 = smov 0   ;;  %s821_s18 = smov 0  }
   0xa   :  { %s823_s19 = smov 0   ;;  %s825_s20 = smov 0  }
   0xb LB: > { %s846_s21 = sadd.s32 4294967295, %s781_s20   ;;  %s495_s22 = sadd.s32 4294967294, %s781_s20   ;;  %s781_s20 = sphi %s825_s20, %s23_s20   ;;  %s777_s19 = sphi %s823_s19, %s1147_s19   ;;  %s773_s18 = sphi %s821_s18, %s1146_s18   ;;  %s769_s17 = sphi %s819_s17, %s1145_s17   ;;  %s765_s16 = sphi %s817_s16, %s1144_s16   ;;  %s761_s15 = sphi %s815_s15, %s1143_s15  }
   0xc   : > { %s44_s23 = sadd.s32 1, %s769_s17  ;;  %p51_p0 = scmp.ne.s32.totalorder %s769_s17, %s765_s16 }
   0xd   : > { %p52_p1 = scmp.eq.s32.totalorder %s781_s20, 0  ;;  %p57_p2 = scmp.ne.s32.totalorder %s765_s16, %s761_s15 }
   0xe   : > { %p1112_p3 = scmp.eq.s32.totalorder %s846_s21, 0  ;;  %p151_p4 = scmp.eq.s32.totalorder %s846_s21, 1 }
   0xf   : > { %p857_p5 = por %p52_p1, %p51_p0  ;;  %p157_p6 = scmp.eq.s32.totalorder %s495_s22, 1 }
  0x10   : > { %p863_p7 = por %p1112_p3, %p57_p2  ;;  %p867_p8 = por %p151_p4, %p51_p0 }
  0x11   : > { %p871_p9 = por %p157_p6, %p57_p2  ;;  %p496_p10 = scmp.ge.s32.totalorder %s781_s20, 1 }
  0x12   : > { %s1122_s25 = scalar_select %p863_p7, 1, 0 }
  0x13   : > { %s1123_s26 = scalar_select %p867_p8, 1, 0 }
  0x14   : > { %s1124_s27 = scalar_select %p871_p9, 1, 0 }
  0x15   : > { %p164_p11 = scmp.lt.s32.totalorder %s781_s20, 3  ;;  %s783_s29 = smov [#allocation9]  }
  0x16   : > { %s177_s30 = sshll.u32 %s783_s29, 4  ;;  %p548_p1 = scmp.lt.s32.totalorder %s781_s20, 2  ;;  %s178_s30 = int_to_ptr.vmem [resolvable:$true] %s177_s30 }
  0x17   : > { %p878_p13 = pnand %p496_p10, %p164_p11  ;;  %s35_s7 = sadd.s32 1, %s777_s19 }
  0x18   : > { %p887_p4 = pnand %p548_p1, %p857_p5  ;;  %p898_p6 = scmp.ge.s32.totalorder %s35_s7, 2 }
  0x19   : > { %s1125_s28 = scalar_select %p878_p13, 1, 0 }
  0x1a   : > { %p532_p0 = pneg %p878_p13  ;;  %s191_s9 = sand.u32 1, %s769_s17  }
  0x1b   : > { %s1126_s5 = scalar_select %p887_p4, 1, 0 }
  0x1c   : > { %p893_p2 = pnand %p532_p0, %p1112_p3  ;;  %s1129_s2 = sld [smem:[#allocation17_spill]] }
  0x1d   : > { %s1128_s8 = scalar_select %p898_p6, 1, 0 }
  0x1e   : > { %p605_p10 = pneg %p893_p2 }
  0x22   : > { %s603_s12 = scalar_lea.hbm %s1129_s2, 128 }
  0x23   : > { %p604_p5 = scmp.ne.s32.totalorder %s1129_s2, %s603_s12  ;;  %p610_p0 = scmp.lt.u32.totalorder %s603_s12, %s1129_s2 }
  0x25   : > { %p606_p11 = pnand %p605_p10, %p604_p5 }
  0x27   : > { %p607_p1 = pneg %p606_p11 }
  0x29   : > { %p612_p12 = pnand %p610_p0, %p607_p1 }
  0x2b   : > { %615 = shalt.err (!%p612_p12)
}
  0x2c   : > { %s616_s29 = scalar_lea.vmem %s178_s30, 128  ;;  %p624_p7 = scmp.lt.s32.totalorder %s178_s30, %s178_s30 }
  0x2d   : > { %p617_p3 = scmp.ne.s32.totalorder %s178_s30, %s616_s29  ;;  %p625_p13 = scmp.lt.s32.totalorder %s616_s29, %s616_s29 }
  0x2f   : > { %p619_p9 = pnand %p617_p3, %p605_p10  ;;  %p626_p4 = por %p625_p13, %p624_p7 }
  0x31   : > { %p620_p8 = pneg %p619_p9 }
  0x33   : > { %p627_p6 = pnand %p626_p4, %p620_p8 }
  0x35   : > { %630 = shalt.err (!%p627_p6)
}
  0x36   : > { %535 = dma.hbm_to_vmem [thread:$0]  (!%p893_p2), %s1129_s2, 128, %s178_s30, [#allocation8]  }
  0x37   : > { %p1130_p3 = scmp.ne.s32.totalorder %s1128_s8, 0  ;;  %s923_s12 = sshll.u32 %s191_s9, 4 }
  0x38   : > { %s1117_s13 = sshll.u32 %s777_s19, 8  ;;  %s1132_s0 = sld [smem:[#allocation16_spill]] }
  0x39   : > { %s1149_s7 = smov (%p1130_p3, %s35_s7), 0  ;;  %s195_s30 = scalar_lea.vmem [#allocation4], %s923_s12 }
  0x3a   : > { %1131 = sst [smem:[#allocation15_spill]] %s1149_s7  ;;  %s41_s6 = ssub.s32 %s777_s19, %s1149_s7 }
  0x3b   : > { %p42_p7 = scmp.eq.s32.totalorder %s41_s6, 0  ;;  %s203_s8 = sshll.u32 %s195_s30, 4  ;;  %s941_s8 = int_to_ptr.vmem [resolvable:$true] %s203_s8 }
  0x3c   : > { %s943_s10 = scalar_lea.sflag [#allocation5], %s191_s9  ;;  %p1133_p9 = scmp.ne.s32.totalorder %s1126_s5, 0 }
  0x3d   : > { %s939_s29 = scalar_select %p42_p7, %s769_s17, %s44_s23  }
  0x3e   : > { %s933_s24 = scalar_lea.hbm %s1132_s0, %s1117_s13  ;;  %p633_p12 = pneg %p1133_p9 }
  0x3f   : > { %s631_s11 = scalar_lea.hbm %s933_s24, 256  ;;  %s636_s22 = scalar_lea.hbm %s1132_s0, 512 }
  0x40   : > { %p632_p8 = scmp.ne.s32.totalorder %s933_s24, %s631_s11  ;;  %p637_p2 = scmp.lt.u32.totalorder %s933_s24, %s1132_s0 }
  0x41   : > { %p638_p6 = scmp.lt.u32.totalorder %s636_s22, %s631_s11  ;;  %p640_p10 = scmp.lt.u32.totalorder %s631_s11, %s933_s24 }
  0x42   : > { %p634_p13 = pnand %p633_p12, %p632_p8 }
  0x43   : > { %p639_p5 = por %p638_p6, %p637_p2 }
  0x44   : > { %p635_p4 = pneg %p634_p13 }
  0x45   : > { %p641_p11 = por %p640_p10, %p639_p5 }
  0x47   : > { %p642_p1 = pnand %p641_p11, %p635_p4 }
  0x49   : > { %645 = shalt.err (!%p642_p1)
}
  0x4a   : > { %s646_s23 = scalar_lea.vmem %s941_s8, 256  ;;  %s784_s9 = smov [#allocation4]  }
  0x4b   : > { %p647_p0 = scmp.ne.s32.totalorder %s941_s8, %s646_s23  ;;  %s651_s6 = sshll.u32 %s784_s9, 4  ;;  %s652_s6 = int_to_ptr.vmem [resolvable:$false] %s651_s6 }
  0x4c   : > { %s653_s13 = scalar_lea.vmem %s652_s6, 512  ;;  %p654_p8 = scmp.lt.s32.totalorder %s941_s8, %s652_s6 }
  0x4d   : > { %p649_p3 = pnand %p647_p0, %p633_p12  ;;  %p655_p13 = scmp.lt.s32.totalorder %s653_s13, %s646_s23 }
  0x4f   : > { %p650_p7 = pneg %p649_p3  ;;  %p656_p2 = por %p655_p13, %p654_p8 }
  0x51   : > { %p657_p6 = pnand %p656_p2, %p650_p7 }
  0x53   : > { %660 = shalt.err (!%p657_p6)
}
  0x54   : > { %s785_s11 = smov 128   ;;  %s786_s14 = smov 8  }
  0x55   : > { %539 = dma.hbm_to_vmem [thread:$0]  (!%p1133_p9), %s933_s24, 256, %s941_s8, %s943_s10, %s785_s11, %s785_s11, %s786_s14  }
  0x56   : > { %s1134_s22 = sshll.u32 %s777_s19, 8  ;;  %s217_s6 = scalar_lea.vmem [#allocation7], %s923_s12 }
  0x57   : > { %s979_s9 = scalar_lea.hbm %s1108_s1, %s1134_s22  ;;  %s225_s13 = sshll.u32 %s217_s6, 4  ;;  %s982_s13 = int_to_ptr.vmem [resolvable:$true] %s225_s13 }
  0x58   : > { %s213_s0 = sand.u32 1, %s781_s20   ;;  %s661_s7 = scalar_lea.hbm %s979_s9, 256 }
  0x59   : > { %s985_s2 = scalar_lea.sflag [#allocation8], %s213_s0  ;;  %p662_p4 = scmp.ne.s32.totalorder %s979_s9, %s661_s7 }
  0x5a   : > { %s666_s10 = scalar_lea.hbm %s1108_s1, 512  ;;  %p667_p11 = scmp.lt.u32.totalorder %s979_s9, %s1108_s1 }
  0x5b   : > { %p664_p5 = pnand %p662_p4, %p633_p12  ;;  %p668_p1 = scmp.lt.u32.totalorder %s666_s10, %s661_s7 }
  0x5c   : > { %p670_p3 = scmp.lt.u32.totalorder %s661_s7, %s979_s9 }
  0x5d   : > { %p665_p10 = pneg %p664_p5  ;;  %p669_p0 = por %p668_p1, %p667_p11 }
  0x5f   : > { %p671_p7 = por %p670_p3, %p669_p0 }
  0x61   : > { %p672_p8 = pnand %p671_p7, %p665_p10 }
  0x63   : > { %675 = shalt.err (!%p672_p8)
}
  0x64   : > { %s676_s0 = scalar_lea.vmem %s982_s13, 256  ;;  %s787_s12 = smov [#allocation7]  }
  0x65   : > { %p677_p13 = scmp.ne.s32.totalorder %s982_s13, %s676_s0  ;;  %s681_s23 = sshll.u32 %s787_s12, 4  ;;  %s682_s23 = int_to_ptr.vmem [resolvable:$false] %s681_s23 }
  0x66   : > { %s683_s6 = scalar_lea.vmem %s682_s23, 512  ;;  %p684_p4 = scmp.lt.s32.totalorder %s982_s13, %s682_s23 }
  0x67   : > { %p679_p2 = pnand %p677_p13, %p633_p12  ;;  %p685_p5 = scmp.lt.s32.totalorder %s683_s6, %s676_s0 }
  0x69   : > { %p680_p6 = pneg %p679_p2  ;;  %p686_p11 = por %p685_p5, %p684_p4 }
  0x6b   : > { %p687_p1 = pnand %p686_p11, %p680_p6 }
  0x6d   : > { %690 = shalt.err (!%p687_p1)
}
  0x6e   : > { %542 = dma.hbm_to_vmem [thread:$0]  (!%p1133_p9), %s979_s9, 256, %s982_s13, %s985_s2, %s785_s11, %s785_s11, %s786_s14  }
  0x6f   : > { %p1135_p12 = scmp.ne.s32.totalorder %s1125_s28, 0 }
  0x70   : > { %s1017_s7 = sand.u32 (!%p1135_p12), 1, %s765_s16   ;;  %p1136_p10 = scmp.ne.s32.totalorder (!%p1135_p12), %s1122_s25, 0 }
  0x71   : > { %237 = sbr.rel (%p1135_p12) target bundleno = 386 (0x182), region = 36  ;;  %s506_s24 = sshll.u32 (!%p1135_p12), %s1017_s7, 4 }
  0x72   : > { %s240_s8 = scalar_lea.sflag (!%p1135_p12), [#allocation5], %s1017_s7  ;;  %s243_s10 = scalar_lea.vmem (!%p1135_p12), [#allocation4], %s506_s24 }
  0x78   : > { %744 = dma.done.wait (%p1136_p10), %s240_s8, 256  }
  0x79   : > { %746 = vsyncadd (%p1136_p10), %s240_s8, 4294967040  ;;  %s248_s2 = sand.u32 1, %s846_s21   ;;  %s252_s28 = scalar_lea.vmem [#allocation7], %s506_s24 }
  0x7a   : > { %s249_s5 = scalar_lea.sflag [#allocation8], %s248_s2 }
  0x7b   : > { %748 = dma.done.wait (%p1136_p10), %s249_s5, 256  }
  0x7c   : > { %750 = vsyncadd (%p1136_p10), %s249_s5, 4294967040  ;;  %p1137_p9 = scmp.eq.s32.totalorder %s846_s21, 0 }
  0x7e   : > { %752 = dma.done.wait (%p1137_p9), [#allocation8], 128   ;;  %p1138_p0 = pmov %p1137_p9 }
  0x7f   : > { %s509_s11 = sshll.u32 %s1017_s7, 3  ;;  %vm294_vm0 = vcmask 253952   ;;  %p319_p3 = scmp.eq.s32.totalorder %s773_s18, 0  ;;  %v788_v0 = vmov 0.0   ;;  %v297_v1 = vld [vmem:[%s243_s10] sm:$0xff]  ;;  %v298_v2 = vld [vmem:[%s243_s10 + $0x8] sm:$0xff] }
  0x80   : > { %754 = vsyncadd (%p1138_p0), [#allocation8], 4294967168  ;;  %295 = vst.msk [vmem:[#allocation2] sm:$0x1] %vm294_vm0, %v788_v0  ;;  %v299_v3 = vld [vmem:[%s252_s28] sm:$0xff]  ;;  %v300_v4 = vld [vmem:[%s252_s28 + $0x8] sm:$0xff] }
  0x81   : > { %296 = vst.msk [vmem:[#allocation3] sm:$0x1] %vm294_vm0, %v788_v0  ;;  %v301_v5 = vsub.f32 %v297_v1, %v299_v3  ;;  %v302_v6 = vsub.f32 %v298_v2, %v300_v4  ;;  %vm306_vm1 = vcmask 261120   ;;  %s1041_s21 = scalar_lea.vmem [#allocation10], %s509_s11  ;;  %v324_v20 = vld [vmem:[#allocation9] sm:$0xff] (%p319_p3) }
  0x82   : > { %v325_v21 = vld [vmem:[%s1110_s3] sm:$0xff] (%p319_p3) }
  0x83   : > { %v304_v7 = vmul.f32 %v301_v5, %v301_v5  ;;  %v305_v8 = vmul.f32 %v302_v6, %v302_v6  ;;  %v326_v22 = vsub.f32 (%p319_p3), %v324_v20, %v325_v21 }
  0x85   : > { %v307_v9 = vsel %vm306_vm1, %v304_v7, 0.0  ;;  %v308_v10 = vsel %vm306_vm1, %v305_v8, 0.0  ;;  %v328_v23 = vmul.f32 (%p319_p3), %v326_v22, %v326_v22 }
  0x86   : > { %v309_v11 = vadd.f32 %v308_v10, %v307_v9 }
  0x87   : > { %v303_v17 = vld [vmem:[#allocation2] sm:$0x1]  ;;  %v329_v24 = vsel (%p319_p3), %vm306_vm1, %v328_v23, 0.0 }
  0x88   : > { %v310_v12 = vrot.slane %v309_v11, 4  ;;  %v330_v25 = vrot.slane (%p319_p3), %v329_v24, 4  ;;  %v327_v30 = vld [vmem:[#allocation3] sm:$0x1] (%p319_p3) }
  0x8a   : > { %v311_v13 = vadd.f32 %v310_v12, %v309_v11  ;;  %v331_v26 = vadd.f32 (%p319_p3), %v330_v25, %v329_v24 }
  0x8c   : > { %v312_v14 = vrot.slane %v311_v13, 2  ;;  %v332_v27 = vrot.slane (%p319_p3), %v331_v26, 2 }
  0x8e   : > { %v313_v15 = vadd.f32 %v312_v14, %v311_v13  ;;  %v333_v28 = vadd.f32 (%p319_p3), %v332_v27, %v331_v26 }
  0x90   : > { %v314_v16 = vrot.slane %v313_v15, 1  ;;  %323 = sbr.rel (!%p319_p3) target bundleno = 151 (0x97), region = 56  ;;  %v334_v29 = vrot.slane (%p319_p3), %v333_v28, 1 }
  0x92   : > { %v315_v18 = vadd.f32 %v314_v16, %v313_v15  ;;  %v335_v31 = vadd.f32 (%p319_p3), %v334_v29, %v333_v28 }
  0x94   : > { %v316_v19 = vadd.f32 %v315_v18, %v303_v17  ;;  %v336_v32 = vadd.f32 (%p319_p3), %v335_v31, %v327_v30 }
  0x96   : > { %318 = vst.msk [vmem:[#allocation2] sm:$0x1] %vm294_vm0, %v316_v19  ;;  %337 = vst.msk [vmem:[#allocation3] sm:$0x1] (%p319_p3), %vm294_vm0, %v336_v32 }
  0x97 PF: > { %s512_s13 = sshll.u32 %s773_s18, 7  ;;  %s382_s12 = sshll.u32 %s1041_s21, 4  ;;  %s1059_s12 = int_to_ptr.vmem [resolvable:$true] %s382_s12 }
  0x98   : > { %s1057_s8 = scalar_lea.hbm %s1111_s4, %s512_s13  ;;  %s369_s10 = scalar_lea.sflag [#allocation6], %s1017_s7 }
  0x99   : > { %s691_s2 = scalar_lea.vmem %s1059_s12, 128  ;;  %p1139_p8 = scmp.ne.s32.totalorder %s1123_s26, 0 }
  0x9a   : > { %p692_p7 = scmp.ne.s32.totalorder %s1059_s12, %s691_s2  ;;  %s789_s18 = smov [#allocation10]  }
  0x9b   : > { %s695_s5 = sshll.u32 %s789_s18, 4  ;;  %s696_s5 = int_to_ptr.vmem [resolvable:$false] %s695_s5 }
  0x9c   : > { %p693_p13 = pnand %p692_p7, %p1139_p8  ;;  %s697_s28 = scalar_lea.vmem %s696_s5, 256 }
  0x9d   : > { %v341_v33 = vld [vmem:[#allocation2] sm:$0x1]  ;;  %v353_v34 = vld [vmem:[#allocation3] sm:$0x1]  ;;  %p698_p6 = scmp.lt.s32.totalorder %s1059_s12, %s696_s5  ;;  %p699_p4 = scmp.lt.s32.totalorder %s697_s28, %s691_s2 }
  0x9e   : > { %v342_v35 = vsel %vm294_vm0, %v341_v33, 0.0  ;;  %v354_v36 = vsel %vm294_vm0, %v353_v34, 0.0  ;;  %p694_p2 = pneg %p693_p13 }
  0x9f   : > { %343 = vadd.xlane.f32.xlu0 %v342_v35  ;;  %p700_p5 = por %p699_p4, %p698_p6 }
  0xa1   : > { %p701_p11 = pnand %p700_p5, %p694_p2 }
  0xa3   : > { %355 = vadd.xlane.f32.xlu0 %v354_v36 }
 0x12c   : > { %v344_v37 = vpop.xlane.xlu0 %343 }
 0x12d   : > { %v345_v38 = vrot.slane %v344_v37, 4 }
 0x12f   : > { %v346_v39 = vadd.f32 %v345_v38, %v344_v37 }
 0x130   : > { %v356_v40 = vpop.xlane.xlu0 %355 }
 0x131   : > { %v347_v41 = vrot.slane %v346_v39, 2  ;;  %v357_v42 = vrot.slane %v356_v40, 4 }
 0x133   : > { %v358_v43 = vadd.f32 %v357_v42, %v356_v40  ;;  %v348_v44 = vadd.f32 %v347_v41, %v346_v39 }
 0x135   : > { %v359_v45 = vrot.slane %v358_v43, 2  ;;  %v349_v46 = vrot.slane %v348_v44, 1 }
 0x137   : > { %v360_v47 = vadd.f32 %v359_v45, %v358_v43  ;;  %v350_v48 = vadd.f32 %v349_v46, %v348_v44 }
 0x139   : > { %518 = vpush %v350_v48  ;;  %v361_v49 = vrot.slane %v360_v47, 1 }
 0x13b   : > { %v362_v50 = vadd.f32 %v361_v49, %v360_v47 }
 0x13d   : > { %520 = vpush %v362_v50 }
 0x16a   : > { %s519_s9 = spop %518 }
 0x16b   : > { %s352_s22 = smul.f32 0.00048828125, %s519_s9 }
 0x16e   : > { %s521_s30 = spop %520 }
 0x16f   : > { %s364_s0 = smul.f32 0.00390625, %s521_s30 }
 0x171   : > { %s365_s23 = sadd.f32 %s364_s0, %s352_s22 }
 0x173   : > { %v366_v51 = vstv %s365_s23 }
 0x174   : > { %367 = vst [vmem:[%s1041_s21] sm:$0xff] %v366_v51 }
 0x175   : > { %704 = shalt.err (!%p701_p11)
}
 0x176   : > { %s705_s7 = scalar_lea.hbm %s1057_s8, 128  ;;  %s709_s25 = scalar_lea.hbm %s1111_s4, 256 }
 0x177   : > { %p706_p1 = scmp.ne.s32.totalorder %s1057_s8, %s705_s7  ;;  %p710_p9 = scmp.lt.u32.totalorder %s1057_s8, %s1111_s4 }
 0x178   : > { %p711_p0 = scmp.lt.u32.totalorder %s709_s25, %s705_s7  ;;  %p713_p7 = scmp.lt.u32.totalorder %s705_s7, %s1057_s8 }
 0x179   : > { %p707_p12 = pnand %p706_p1, %p1139_p8 }
 0x17a   : > { %p712_p3 = por %p711_p0, %p710_p9 }
 0x17b   : > { %p708_p10 = pneg %p707_p12 }
 0x17c   : > { %p714_p13 = por %p713_p7, %p712_p3 }
 0x17e   : > { %p715_p2 = pnand %p714_p13, %p708_p10 }
 0x180   : > { %718 = shalt.err (!%p715_p2)
}
 0x181   : > { %530 = dma.vmem_to_hbm [thread:$0]  (%p1139_p8), %s1059_s12, 128, %s1057_s8, %s369_s10  }
 0x182 PF: > { %s394_s13 = sand.u32 1, %s761_s15   ;;  %p1140_p6 = scmp.ne.s32.totalorder %s1124_s27, 0 }
 0x183   : > { %p1141_p4 = scmp.ge.s32.totalorder %s781_s20, 2  ;;  %s395_s22 = scalar_lea.sflag [#allocation6], %s394_s13 }
 0x185   : > { %p544_p5 = pnand %p1141_p4, %p1140_p6 }
 0x187   : > { %756 = dma.done.wait (!%p544_p5), %s395_s22, 128  }
 0x188   : > { %758 = vsyncadd (!%p544_p5), %s395_s22, 4294967168  ;;  %s23_s20 = sadd.s32 1, %s781_s20   ;;  %s1142_s26 = sld [smem:[#allocation15_spill]] }
 0x189   : > { %p20_p11 = scmp.ge.s32.totalorder %s23_s20, 4   ;;  %s1143_s15 = smov %s765_s16 }
 0x18a   : > { %s1144_s16 = smov %s769_s17  ;;  %s1145_s17 = smov %s939_s29 }
 0x18b   : > { %s1146_s18 = smov %s777_s19  ;;  %22 = sbr.rel (!%p20_p11) target bundleno = 11 (0xb), region = 110 }
 0x18e   : > { %s1147_s19 = smov %s1142_s26 }
 0x192   :  { %400 = vsyncpa [#allocation5], 1 }
 0x193   :  { %402 = vsyncpa [#allocation5 + $0x1], 1 }
 0x194   :  { %403 = vsyncpa [#allocation8], 1 }
 0x195   :  { %405 = vsyncpa [#allocation8 + $0x1], 1 }
 0x196   :  { %406 = vsyncpa [#allocation6], 1 }
 0x197   :  { %408 = vsyncpa [#allocation6 + $0x1], 1 }

</bundles_post_ra>
